<compile_context>
chip_gen: v7x
topology: tpu7x:2x2x1
jax: 0.10.0
libtpu: 0.0.40
codegen_flags: <defaults>
</compile_context>

<pallas_src>
import numpy as np
import jax
import jax.numpy as jnp
from jax.experimental import pallas as pl
from jax.experimental.pallas import tpu as pltpu


# ----------------------------------------------------------------------------
# Deterministic parameter construction (mirrors module __init__ / init_weights)
# ----------------------------------------------------------------------------
def get_1d_sincos_pos_embed_from_grid(embed_dim, pos):
    assert embed_dim % 2 == 0
    omega = np.arange(embed_dim // 2, dtype=np.float64)
    omega /= embed_dim / 2.0
    omega = 1.0 / 10000 ** omega                    # (D/2,)
    pos = pos.reshape(-1)                           # (M,)
    out = np.einsum("m,d->md", pos, omega)          # (M, D/2)
    emb_sin = np.sin(out)
    emb_cos = np.cos(out)
    return np.concatenate([emb_sin, emb_cos], axis=1)  # (M, D)


def get_2d_sincos_pos_embed(embed_dim, grid_size, cls_token=False):
    grid_h = np.arange(grid_size, dtype=np.float64)
    grid_w = np.arange(grid_size, dtype=np.float64)
    grid = np.meshgrid(grid_w, grid_h)              # w goes first (matches MAE)
    grid = np.stack(grid, axis=0)
    grid = grid.reshape([2, 1, grid_size, grid_size])
    emb_h = get_1d_sincos_pos_embed_from_grid(embed_dim // 2, grid[0])
    emb_w = get_1d_sincos_pos_embed_from_grid(embed_dim // 2, grid[1])
    pos_embed = np.concatenate([emb_h, emb_w], axis=1)  # (L, D)
    if cls_token:
        pos_embed = np.concatenate([np.zeros([1, embed_dim]), pos_embed], axis=0)
    return pos_embed.astype(np.float32)


def xavier_uniform(key, shape):
    fan_in, fan_out = shape[1], shape[0]
    bound = float(np.sqrt(6.0 / (fan_in + fan_out)))
    return jax.random.uniform(key, shape, jnp.float32, -bound, bound)


# ----------------------------------------------------------------------------
# Pallas kernel: row-slab patch-embedding matmul + (pos-embed + bias) add
# ----------------------------------------------------------------------------
def _patch_embed_kernel(p_ref, w_ref, pos_ref, o_ref):
    # p_ref:   (TM, CPP)  im2col rows for the kept tokens (all images flattened)
    # w_ref:   (CPP, D)   conv weight, flattened + transposed (VMEM-resident)
    # pos_ref: (TM, D)    per-row (positional embedding + conv bias)
    # o_ref:   (TM, D)
    y = jnp.dot(p_ref[...], w_ref[...], preferred_element_type=jnp.float32)
    o_ref[...] = (y + pos_ref[...]).astype(o_ref.dtype)


def _round_up(x, m):
    return (x + m - 1) // m * m


def _choose_row_tile(rows):
    """Row tile: target ~256 rows per MXU pass, but keep >=2 grid steps when
    there is enough work so both v7x TensorCores are used."""
    rows8 = _round_up(max(rows, 8), 8)
    tm = min(256, rows8)
    if tm == rows8 and rows8 >= 16:
        tm = _round_up(rows8 // 2, 8)
    return tm


def patch_embed_pallas(rows, w_t, pos_rows):
    """rows: [R, CPP]; w_t: [CPP, D]; pos_rows: [R, D]  ->  [R, D] (f32)."""
    R, CPP = rows.shape
    D = w_t.shape[1]
    tm = _choose_row_tile(R)
    Rp = _round_up(R, tm)
    if Rp != R:
        rows = jnp.pad(rows, ((0, Rp - R), (0, 0)))
        pos_rows = jnp.pad(pos_rows, ((0, Rp - R), (0, 0)))

    out = pl.pallas_call(
        _patch_embed_kernel,
        out_shape=jax.ShapeDtypeStruct((Rp, D), jnp.float32),
        grid_spec=pltpu.PrefetchScalarGridSpec(
            num_scalar_prefetch=0,
            grid=(Rp // tm,),
            in_specs=[
                pl.BlockSpec((tm, CPP), lambda i: (i, 0)),
                pl.BlockSpec((CPP, D), lambda i: (0, 0)),   # resident weight
                pl.BlockSpec((tm, D), lambda i: (i, 0)),
            ],
            out_specs=pl.BlockSpec((tm, D), lambda i: (i, 0)),
        ),
        compiler_params=pltpu.CompilerParams(
            dimension_semantics=("parallel",)),
    )(rows, w_t, pos_rows)
    return out[:R] if Rp != R else out


# ----------------------------------------------------------------------------
# Full forward (PatchEmbed conv -> +pos -> random masking -> cls concat)
# ----------------------------------------------------------------------------
class ViTEmbeddingEncoderPallas:
    def __init__(self, img_size=16, patch_size=4, in_chans=3, embed_dim=128,
                 seed=0):
        self.img_size = img_size
        self.patch_size = patch_size
        self.in_chans = in_chans
        self.embed_dim = embed_dim
        self.grid = img_size // patch_size
        self.num_patches = self.grid * self.grid

        k = jax.random.PRNGKey(seed)
        kw, kc = jax.random.split(k)
        cpp = in_chans * patch_size * patch_size
        # conv weight [D, C, p, p], xavier_uniform on its [D, C*p*p] view
        w_flat = xavier_uniform(kw, (embed_dim, cpp))           # [D, CPP]
        self.w_t = jnp.transpose(w_flat)                        # [CPP, D]
        self.bias = jnp.zeros((1, embed_dim), jnp.float32)      # conv bias
        self.cls_token = 0.02 * jax.random.normal(kc, (1, 1, embed_dim),
                                                  jnp.float32)
        pos = get_2d_sincos_pos_embed(embed_dim, self.grid, cls_token=True)
        self.pos_embed = jnp.asarray(pos)[None]                 # [1, L+1, D]

    def _patchify(self, imgs):
        # imgs: [N, C, H, W]  -> [N, L, C*p*p]  (matches conv-weight flattening)
        N, C, H, W = imgs.shape
        p = self.patch_size
        h = H // p
        w = W // p
        x = imgs.reshape(N, C, h, p, w, p)
        x = jnp.transpose(x, (0, 2, 4, 1, 3, 5))                # N, h, w, C, p, p
        return x.reshape(N, h * w, C * p * p)

    def __call__(self, imgs, mask_key):
        mask_ratio = 0.75
        patches = self._patchify(imgs)                          # [N, L, CPP]
        N, L, CPP = patches.shape
        D = self.embed_dim
        len_keep = int(L * (1 - mask_ratio))

        # ---- random masking indices (glue; independent of embedding values) --
        noise = jax.random.uniform(mask_key, (N, L))
        ids_shuffle = jnp.argsort(noise, axis=1)
        ids_restore = jnp.argsort(ids_shuffle, axis=1)
        ids_keep = ids_shuffle[:, :len_keep]                    # [N, K]

        # Gather the kept im2col rows and their (pos + bias) rows BEFORE the
        # matmul: the embedding is per-token, so this is exactly equivalent to
        # embedding all tokens and gathering afterwards, at 1/4 the kernel work.
        patches_kept = jnp.take_along_axis(patches, ids_keep[..., None],
                                           axis=1)              # [N, K, CPP]
        pos_pb = self.pos_embed[0, 1:, :] + self.bias           # [L, D] (bias folded)
        pos_kept = jnp.take(pos_pb, ids_keep, axis=0)           # [N, K, D]

        rows = patches_kept.reshape(N * len_keep, CPP)
        pos_rows = pos_kept.reshape(N * len_keep, D)
        # Hot path in Pallas: conv-as-matmul + (pos+bias) add, kept tokens only.
        x_masked = patch_embed_pallas(rows, self.w_t, pos_rows)
        x_masked = x_masked.reshape(N, len_keep, D)

        # TODO(synk): argsort-based shuffling / binary-mask construction stays
        # in plain JAX (no clean Pallas equivalent worth writing at this size).
        mask = jnp.ones((N, L), jnp.float32)
        mask = mask.at[:, :len_keep].set(0.0)
        mask = jnp.take_along_axis(mask, ids_restore, axis=1)

        cls_token = self.cls_token + self.pos_embed[:, :1, :]   # [1, 1, D]
        cls_tokens = jnp.broadcast_to(cls_token, (N, 1, D))
        x = jnp.concatenate([cls_tokens, x_masked], axis=1)
        return x, mask, ids_restore, imgs


if __name__ == "__main__":
    N, C, H, W = 2, 3, 16, 16
    model = ViTEmbeddingEncoderPallas(img_size=H, patch_size=4, in_chans=C,
                                      embed_dim=128, seed=0)

    key = jax.random.PRNGKey(0)
    k_img, k_mask = jax.random.split(key)
    imgs = jax.random.normal(k_img, (N, C, H, W), jnp.float32)

    x, mask, ids_restore, imgs_out = model(imgs, k_mask)
    jax.block_until_ready((x, mask, ids_restore, imgs_out))

    L = model.num_patches
    D = model.embed_dim
    len_keep = int(L * (1 - 0.75))
    assert x.shape == (N, len_keep + 1, D)
    assert mask.shape == (N, L)
    assert ids_restore.shape == (N, L)
    assert imgs_out.shape == imgs.shape

    # ---- pure-JAX reference forward in the ORIGINAL op order ----------------
    patches = model._patchify(imgs)                             # [N, L, CPP]
    full = (jnp.einsum("nlc,cd->nld", patches, model.w_t)
            + model.bias[None] + model.pos_embed[:, 1:, :])     # [N, L, D]
    noise = jax.random.uniform(k_mask, (N, L))                  # same key -> same ids
    ids_shuffle_ref = jnp.argsort(noise, axis=1)
    ids_restore_ref = jnp.argsort(ids_shuffle_ref, axis=1)
    ids_keep_ref = ids_shuffle_ref[:, :len_keep]
    x_masked_ref = jnp.take_along_axis(full, ids_keep_ref[..., None], axis=1)
    cls_ref = jnp.broadcast_to(model.cls_token + model.pos_embed[:, :1, :],
                               (N, 1, D))
    x_ref = jnp.concatenate([cls_ref, x_masked_ref], axis=1)
    mask_ref = jnp.ones((N, L), jnp.float32).at[:, :len_keep].set(0.0)
    mask_ref = jnp.take_along_axis(mask_ref, ids_restore_ref, axis=1)

    np.testing.assert_array_equal(np.asarray(ids_restore),
                                  np.asarray(ids_restore_ref))
    np.testing.assert_allclose(np.asarray(mask), np.asarray(mask_ref))
    np.testing.assert_allclose(np.asarray(x), np.asarray(x_ref),
                               rtol=1e-5, atol=1e-5)

    print("KERNEL_OK")
</pallas_src>

<mosaic_0001>
module attributes {stable_mosaic.version = 11 : i64} {
  func.func @_patch_embed_kernel(%arg0: i32, %arg1: memref<8x48xf32, #tpu.memory_space<vmem>>, %arg2: memref<48x128xf32, #tpu.memory_space<vmem>>, %arg3: memref<8x128xf32, #tpu.memory_space<vmem>>, %arg4: memref<8x128xf32, #tpu.memory_space<vmem>>) attributes {dimension_semantics = [#tpu.dimension_semantics<parallel>], iteration_bounds = array<i64: 1>, scalar_prefetch = 0 : i64, scratch_operands = 0 : i64, tpu.core_type = #tpu.core_type<tc>, window_params = [{transform_indices = @transform_0, window_bounds = array<i64: 8, 48>}, {pipeline_mode = #tpu.pipeline_mode<synchronous>, transform_indices = @transform_1, window_bounds = array<i64: 48, 128>}, {transform_indices = @transform_2, window_bounds = array<i64: 8, 128>}, {transform_indices = @transform_3, window_bounds = array<i64: 8, 128>}]} {
    %c0 = arith.constant 0 : index
    %c0_0 = arith.constant 0 : index
    %0 = vector.load %arg1[%c0, %c0_0] : memref<8x48xf32, #tpu.memory_space<vmem>>, vector<8x48xf32>
    %c0_1 = arith.constant 0 : index
    %c0_2 = arith.constant 0 : index
    %1 = vector.load %arg2[%c0_1, %c0_2] : memref<48x128xf32, #tpu.memory_space<vmem>>, vector<48x128xf32>
    %cst = arith.constant dense<0.000000e+00> : vector<8x128xf32>
    %2 = tpu.matmul %0, %1, %cst {dimension_numbers = #tpu.dot_dimension_numbers<[1], [0], [0], [1], [0, 0, 1, 1], [], []>} : vector<8x48xf32>, vector<48x128xf32>, vector<8x128xf32> -> vector<8x128xf32>
    %c0_3 = arith.constant 0 : index
    %c0_4 = arith.constant 0 : index
    %3 = vector.load %arg3[%c0_3, %c0_4] : memref<8x128xf32, #tpu.memory_space<vmem>>, vector<8x128xf32>
    %4 = arith.addf %2, %3 : vector<8x128xf32>
    %c0_5 = arith.constant 0 : index
    %c0_6 = arith.constant 0 : index
    %5 = vector.load %arg4[%c0_5, %c0_6] : memref<8x128xf32, #tpu.memory_space<vmem>>, vector<8x128xf32>
    tpu.vector_store %arg4[%c0_5, %c0_6], %4 {strides = array<i32>} : memref<8x128xf32, #tpu.memory_space<vmem>>, vector<8x128xf32>,
    return
  }
  func.func @transform_0(%arg0: i32) -> (i32, i32) {
    %c0_i32 = arith.constant 0 : i32
    %c0_i32_0 = arith.constant 0 : i32
    return %arg0, %c0_i32 : i32, i32
  }
  func.func @transform_1(%arg0: i32) -> (i32, i32) {
    %c0_i32 = arith.constant 0 : i32
    %c0_i32_0 = arith.constant 0 : i32
    %c0_i32_1 = arith.constant 0 : i32
    return %c0_i32, %c0_i32_0 : i32, i32
  }
  func.func @transform_2(%arg0: i32) -> (i32, i32) {
    %c0_i32 = arith.constant 0 : i32
    %c0_i32_0 = arith.constant 0 : i32
    return %arg0, %c0_i32 : i32, i32
  }
  func.func @transform_3(%arg0: i32) -> (i32, i32) {
    %c0_i32 = arith.constant 0 : i32
    %c0_i32_0 = arith.constant 0 : i32
    return %arg0, %c0_i32 : i32, i32
  }
}

</mosaic_0001>

<bundles_post_ra>
// kernel: tpu_custom_call.1
= control target key start
LH: loop header
LB: loop body
LE: loop exit
PB: predicated region body
PF: predicated region fallthrough
CT: control target
= control target key end

     0   :  { %8 = vsyncpa [#allocation3], 0  ;;  %s363_s0 = inlined_call_operand.hbm [shape: f32[8,48], index: 0, kind: input, shape index: {}]   ;;  %s364_s1 = inlined_call_operand.hbm [shape: f32[48,128], index: 1, kind: input, shape index: {}]   ;;  %s365_s2 = inlined_call_operand.hbm [shape: f32[8,128], index: 2, kind: input, shape index: {}]   ;;  %s366_s3 = inlined_call_operand.hbm [shape: f32[8,128], index: 3, kind: output, shape index: {}]  }
   0x1   :  { %9 = vsyncpa [#allocation6], 0 }
   0x2   :  { %10 = vsyncpa [#allocation4], 0  ;;  %s286_s12 = smov [#allocation5]   ;;  %s192_s16 = scalar_lea.hbm %s364_s1, 768 }
   0x3   :  { %s26_s13 = sshll.u32 %s286_s12, 4  ;;  %p193_p0 = scmp.ne.s32.totalorder %s364_s1, %s192_s16  ;;  %s27_s13 = int_to_ptr.vmem [resolvable:$true] %s26_s13 }
   0x4   :  { %p196_p1 = scmp.lt.u32.totalorder %s192_s16, %s364_s1 }
   0x6   :  { %p198_p2 = pnand %p196_p1, %p193_p0 }
   0x8   :  { %201 = shalt.err (!%p198_p2)
}
   0x9   :  { %s202_s21 = scalar_lea.vmem %s27_s13, 768  ;;  %p207_p4 = scmp.lt.s32.totalorder %s27_s13, %s27_s13 }
   0xa   :  { %p203_p3 = scmp.ne.s32.totalorder %s27_s13, %s202_s21  ;;  %p208_p5 = scmp.lt.s32.totalorder %s202_s21, %s202_s21 }
   0xc   :  { %p209_p6 = por %p208_p5, %p207_p4 }
   0xe   :  { %p210_p7 = pnand %p209_p6, %p203_p3 }
  0x10   :  { %213 = shalt.err (!%p210_p7)
}
  0x11   :  { %s287_s22 = smov 128   ;;  %s288_s23 = smov 8  }
  0x12   :  { %32 = dma.hbm_to_vmem [thread:$0]  %s364_s1, 768, %s27_s13, [#allocation6], %s287_s22, %s287_s22, %s288_s23  }
  0x13   :  { %s289_s26 = smov [#allocation2]   ;;  %s290_s28 = smov [#allocation7]  }
  0x14   :  { %s17_s27 = sshll.u32 %s289_s26, 4  ;;  %s39_s29 = sshll.u32 %s290_s28, 4  ;;  %s18_s27 = int_to_ptr.vmem [resolvable:$true] %s17_s27  ;;  %s40_s29 = int_to_ptr.vmem [resolvable:$true] %s39_s29 }
  0x15   :  { %s214_s5 = scalar_lea.hbm %s363_s0, 128 }
  0x16   :  { %p215_p8 = scmp.ne.s32.totalorder %s363_s0, %s214_s5  ;;  %p218_p9 = scmp.lt.u32.totalorder %s214_s5, %s363_s0 }
  0x18   :  { %p220_p10 = pnand %p218_p9, %p215_p8 }
  0x1a   :  { %223 = shalt.err (!%p220_p10)
}
  0x1b   :  { %s224_s1 = scalar_lea.vmem %s18_s27, 128  ;;  %p229_p12 = scmp.lt.s32.totalorder %s18_s27, %s18_s27 }
  0x1c   :  { %p225_p11 = scmp.ne.s32.totalorder %s18_s27, %s224_s1  ;;  %p230_p13 = scmp.lt.s32.totalorder %s224_s1, %s224_s1 }
  0x1e   :  { %p231_p0 = por %p230_p13, %p229_p12 }
  0x20   :  { %p232_p1 = pnand %p231_p0, %p225_p11 }
  0x22   :  { %235 = shalt.err (!%p232_p1)
}
  0x23   :  { %20 = dma.hbm_to_vmem [thread:$0]  %s363_s0, 128, %s18_s27, [#allocation3]  }
  0x24   :  { %s236_s14 = scalar_lea.hbm %s365_s2, 128 }
  0x25   :  { %p237_p2 = scmp.ne.s32.totalorder %s365_s2, %s236_s14  ;;  %p240_p3 = scmp.lt.u32.totalorder %s236_s14, %s365_s2 }
  0x27   :  { %p242_p4 = pnand %p240_p3, %p237_p2 }
  0x29   :  { %245 = shalt.err (!%p242_p4)
}
  0x2a   :  { %s246_s19 = scalar_lea.vmem %s40_s29, 128  ;;  %p251_p6 = scmp.lt.s32.totalorder %s40_s29, %s40_s29 }
  0x2b   :  { %p247_p5 = scmp.ne.s32.totalorder %s40_s29, %s246_s19  ;;  %p252_p7 = scmp.lt.s32.totalorder %s246_s19, %s246_s19 }
  0x2d   :  { %p253_p8 = por %p252_p7, %p251_p6 }
  0x2f   :  { %p254_p9 = pnand %p253_p8, %p247_p5 }
  0x31   :  { %257 = shalt.err (!%p254_p9)
}
  0x32   :  { %42 = dma.hbm_to_vmem [thread:$0]  %s365_s2, 128, %s40_s29, [#allocation6]  }
  0x33   :  { %280 = dma.done.wait [#allocation3], 128  }
  0x34   :  { %281 = vsyncadd [#allocation3], 4294967168 }
  0x35   :  { %282 = dma.done.wait [#allocation6], 896  }
  0x36   :  { %283 = vsyncadd [#allocation6], 4294966400  ;;  %v291_v0 = vmov 0.0|0.0   ;;  %vm292_vm0 = vmmov 0   ;;  %v293_v1 = vmov 0.0   ;;  %v53_v2 = vld [vmem:[#allocation5] sm:$0xff] }
  0x37   :  { %174 = vmatprep.subr.bf16.mxu0 %v291_v0  ;;  %171 = vmatprep.mubr.msk.f32.mxu0 %vm292_vm0, %v293_v1  ;;  %v54_v3 = vld [vmem:[#allocation5 + $0x8] sm:$0xff]  ;;  %v55_v4 = vld [vmem:[#allocation5 + $0x10] sm:$0xff]  ;;  %v56_v6 = vld [vmem:[#allocation5 + $0x18] sm:$0xff]  ;;  %vm60_vm1 = vcmask 392192   ;;  %s294_s2 = smov [#allocation8]  }
  0x38   :  { %v175_v5 = vpack.c.bf16 %v54_v3, %v53_v2  ;;  %v178_v7 = vpack.c.bf16 %v56_v6, %v55_v4  ;;  %v57_v8 = vld [vmem:[#allocation5 + $0x20] sm:$0xff]  ;;  %v58_v9 = vld [vmem:[#allocation5 + $0x28] sm:$0xff]  ;;  %v52_v11 = vld [vmem:[#allocation2] sm:$0xff]  ;;  %s141_s21 = sshll.u32 %s294_s2, 4  ;;  %s142_s21 = int_to_ptr.vmem [resolvable:$true] %s141_s21 }
  0x39   :  { %v181_v10 = vpack.c.bf16 %v58_v9, %v57_v8  ;;  %v59_v12 = vld [vmem:[#allocation7] sm:$0xff]  ;;  %s258_s22 = scalar_lea.vmem %s142_s21, 128  ;;  %p263_p11 = scmp.lt.s32.totalorder %s142_s21, %s142_s21 }
  0x3a   :  { %176 = vmatpush3.bf16.msra.mxu0 %v175_v5  ;;  %p259_p10 = scmp.ne.s32.totalorder %s142_s21, %s258_s22  ;;  %p264_p12 = scmp.lt.s32.totalorder %s258_s22, %s258_s22 }
  0x3b   :  { %177 = vmatprep.subr.bf16.mxu0 %v291_v0 }
  0x3c   :  { %p265_p13 = por %p264_p12, %p263_p11 }
  0x3e   :  { %179 = vmatpush3.bf16.msra.mxu0 %v178_v7  ;;  %p266_p0 = pnand %p265_p13, %p259_p10 }
  0x3f   :  { %180 = vmatprep.subr.bf16.mxu0 %v291_v0 }
  0x42   :  { %182 = vmatpush3.bf16.msra.mxu0 %v181_v10 }
  0x45   :  { %172 = vmatmul.mubr.msk.f32.vlgmr.msra.gmra.mrb[0].mxu0 %vm60_vm1, %v52_v11 }
 0x118   :  { %v130_v13 = vpop.f32.mrb[0].mxu0 }
 0x119   :  { %v131_v14 = vadd.f32 %v130_v13, %v59_v12  ;;  %v173_v15 = vpop.f32.mrb[1].mxu0 }
 0x11b   :  { %134 = vst [vmem:[#allocation8] sm:$0xff] %v131_v14 }
 0x11c   :  { %269 = shalt.err (!%p266_p0)
}
 0x11d   :  { %s270_s25 = scalar_lea.hbm %s366_s3, 128 }
 0x11e   :  { %p271_p1 = scmp.ne.s32.totalorder %s366_s3, %s270_s25  ;;  %p274_p2 = scmp.lt.u32.totalorder %s270_s25, %s366_s3 }
 0x120   :  { %p276_p3 = pnand %p274_p2, %p271_p1 }
 0x122   :  { %279 = shalt.err (!%p276_p3)
}
 0x123   :  { %144 = dma.vmem_to_hbm [thread:$0]  %s142_s21, 128, %s366_s3, [#allocation4]  }
 0x124   :  { %284 = dma.done.wait [#allocation4], 128  }
 0x125   :  { %285 = vsyncadd [#allocation4], 4294967168 }
 0x126   :  { %148 = vsyncpa [#allocation3], 1 }
 0x127   :  { %149 = vsyncpa [#allocation6], 1 }
 0x128   :  { %150 = vsyncpa [#allocation4], 1 }

</bundles_post_ra>
